<compile_context>
chip_gen: v6e
topology: v6e:2x2x1
jax: 0.10.0
libtpu: 0.0.40
codegen_flags: <defaults>
</compile_context>

<pallas_src>
import functools

import jax
import jax.numpy as jnp
from jax.experimental import pallas as pl
from jax.experimental.pallas import tpu as pltpu


def _rope_kernel(x_ref, cos_ref, sin_ref, perm_ref, o_ref):
    # x_ref/o_ref: (tT, D) (batch dim squeezed); cos/sin: (tT, D); perm: (D, D).
    x = x_ref[...].astype(jnp.float32)
    # rotate_half(x) as a signed-permutation matmul (exact at HIGHEST precision).
    rot = jax.lax.dot_general(
        x,
        perm_ref[...],
        dimension_numbers=(((1,), (0,)), ((), ())),
        precision=jax.lax.Precision.HIGHEST,
        preferred_element_type=jnp.float32,
    )
    o_ref[...] = (x * cos_ref[...] + rot * sin_ref[...]).astype(o_ref.dtype)


def _choose_t_tile(T, D, itemsize):
    """Largest T-tile (multiple of 8, divisor of T) with ~<=1 MiB per input tile."""
    target_rows = max(8, (1 << 20) // max(1, D * itemsize))
    if T <= target_rows:
        return T
    for tile in (1024, 512, 256, 128, 64, 32, 16, 8):
        if tile <= target_rows and T % tile == 0:
            return tile
    return T


@functools.partial(jax.jit, static_argnames=("base",))
def rotary_positional_embedding(x, base=10000.0):
    """Pallas implementation of RotaryPositionalEmbedding.forward. x: (B, T, D)."""
    B, T, D = x.shape
    if D % 2 != 0:
        raise ValueError("dim must be even")
    half = D // 2

    # --- position / frequency tables (float32, tiny, computed once) ---
    t = jnp.arange(T, dtype=jnp.float32)
    inv_freq = 1.0 / (base ** (jnp.arange(0, D, 2, dtype=jnp.float32) / D))
    freqs = t[:, None] * inv_freq[None, :]                        # (T, half)
    emb = jnp.concatenate([jnp.sin(freqs), jnp.cos(freqs)], -1)   # (T, D)
    cos_tab = jnp.cos(emb)   # cos of the sin/cos table, exactly as in the module
    sin_tab = jnp.sin(emb)

    # --- signed permutation matrix implementing rotate_half via one matmul ---
    # (x @ perm)[:, j] = -x[:, 2j+1]      for j <  half
    #                  =  x[:, 2(j-half)] for j >= half
    # TODO(synk): for very large D (>~2048) replace the (D, D) matmul with an
    # in-kernel lane shuffle to avoid the O(D^2) constant table.
    j = jnp.arange(half)
    perm = jnp.zeros((D, D), jnp.float32)
    perm = perm.at[2 * j + 1, j].set(-1.0)
    perm = perm.at[2 * j, j + half].set(1.0)

    tT = _choose_t_tile(T, D, x.dtype.itemsize)
    grid = (B, T // tT)

    return pl.pallas_call(
        _rope_kernel,
        out_shape=jax.ShapeDtypeStruct((B, T, D), x.dtype),
        grid=grid,
        in_specs=[
            pl.BlockSpec((None, tT, D), lambda b, i: (b, i, 0)),  # x (B squeezed)
            pl.BlockSpec((tT, D), lambda b, i: (i, 0)),           # cos table
            pl.BlockSpec((tT, D), lambda b, i: (i, 0)),           # sin table
            pl.BlockSpec((D, D), lambda b, i: (0, 0)),            # perm matrix
        ],
        out_specs=pl.BlockSpec((None, tT, D), lambda b, i: (b, i, 0)),
        compiler_params=pltpu.CompilerParams(
            dimension_semantics=("parallel", "parallel")),
    )(x, cos_tab, sin_tab, perm)


# ----------------------- pure-JAX reference (matches the PyTorch module) -----
def _rotate_half(x):
    x1 = x[..., ::2]
    x2 = x[..., 1::2]
    return jnp.concatenate([-x2, x1], axis=-1)


def _reference(x, base=10000.0):
    _, T, D = x.shape
    t = jnp.arange(T, dtype=jnp.float32)
    inv_freq = 1.0 / (base ** (jnp.arange(0, D, 2, dtype=jnp.float32) / D))
    freqs = t[:, None] * inv_freq[None, :]
    emb = jnp.concatenate([jnp.sin(freqs), jnp.cos(freqs)], axis=-1)[None, :, :]
    return x * jnp.cos(emb) + _rotate_half(x) * jnp.sin(emb)


if __name__ == "__main__":
    # Small shapes consistent with the module: (batch, seq, dim), dim even.
    B, T, D = 2, 8, 32
    key = jax.random.PRNGKey(0)
    x = jax.random.normal(key, (B, T, D), dtype=jnp.float32)

    out = rotary_positional_embedding(x)
    out = jax.block_until_ready(out)
    ref = _reference(x)

    ok = (out.shape == (B, T, D)) and bool(
        jnp.allclose(out, ref, atol=1e-5, rtol=1e-5))

    if ok:
        print("KERNEL_OK")
    else:
        print("MISMATCH max_abs_err =", float(jnp.max(jnp.abs(out - ref))))
</pallas_src>

<mosaic_0001>
module attributes {stable_mosaic.version = 11 : i64} {
  func.func @_rope_kernel(%arg0: i32, %arg1: i32, %arg2: memref<1x8x32xf32, #tpu.memory_space<vmem>>, %arg3: memref<8x32xf32, #tpu.memory_space<vmem>>, %arg4: memref<8x32xf32, #tpu.memory_space<vmem>>, %arg5: memref<32x32xf32, #tpu.memory_space<vmem>>, %arg6: memref<1x8x32xf32, #tpu.memory_space<vmem>>) attributes {dimension_semantics = [#tpu.dimension_semantics<parallel>, #tpu.dimension_semantics<parallel>], iteration_bounds = array<i64: 2, 1>, scalar_prefetch = 0 : i64, scratch_operands = 0 : i64, tpu.core_type = #tpu.core_type<tc>, window_params = [{transform_indices = @transform_0, window_bounds = array<i64: 1, 8, 32>}, {transform_indices = @transform_1, window_bounds = array<i64: 8, 32>}, {transform_indices = @transform_2, window_bounds = array<i64: 8, 32>}, {pipeline_mode = #tpu.pipeline_mode<synchronous>, transform_indices = @transform_3, window_bounds = array<i64: 32, 32>}, {transform_indices = @transform_4, window_bounds = array<i64: 1, 8, 32>}]} {
    %c0 = arith.constant 0 : index
    %c0_0 = arith.constant 0 : index
    %c0_1 = arith.constant 0 : index
    %0 = vector.load %arg2[%c0, %c0_0, %c0_1] : memref<1x8x32xf32, #tpu.memory_space<vmem>>, vector<1x8x32xf32>
    %1 = vector.shape_cast %0 : vector<1x8x32xf32> to vector<8x32xf32>
    %c0_2 = arith.constant 0 : index
    %c0_3 = arith.constant 0 : index
    %2 = vector.load %arg5[%c0_2, %c0_3] : memref<32x32xf32, #tpu.memory_space<vmem>>, vector<32x32xf32>
    %cst = arith.constant dense<0.000000e+00> : vector<8x32xf32>
    %3 = tpu.matmul %1, %2, %cst {dimension_numbers = #tpu.dot_dimension_numbers<[1], [0], [0], [1], [0, 0, 1, 1], [], []>, precision = #tpu.contract_precision<fp32>} : vector<8x32xf32>, vector<32x32xf32>, vector<8x32xf32> -> vector<8x32xf32>
    %c0_4 = arith.constant 0 : index
    %c0_5 = arith.constant 0 : index
    %4 = vector.load %arg3[%c0_4, %c0_5] : memref<8x32xf32, #tpu.memory_space<vmem>>, vector<8x32xf32>
    %5 = arith.mulf %1, %4 : vector<8x32xf32>
    %c0_6 = arith.constant 0 : index
    %c0_7 = arith.constant 0 : index
    %6 = vector.load %arg4[%c0_6, %c0_7] : memref<8x32xf32, #tpu.memory_space<vmem>>, vector<8x32xf32>
    %7 = arith.mulf %3, %6 : vector<8x32xf32>
    %8 = arith.addf %5, %7 : vector<8x32xf32>
    %c0_8 = arith.constant 0 : index
    %c0_9 = arith.constant 0 : index
    %c0_10 = arith.constant 0 : index
    %9 = vector.load %arg6[%c0_8, %c0_9, %c0_10] : memref<1x8x32xf32, #tpu.memory_space<vmem>>, vector<1x8x32xf32>
    %10 = vector.shape_cast %9 : vector<1x8x32xf32> to vector<8x32xf32>
    %11 = vector.shape_cast %8 : vector<8x32xf32> to vector<1x8x32xf32>
    tpu.vector_store %arg6[%c0_8, %c0_9, %c0_10], %11 {strides = array<i32>} : memref<1x8x32xf32, #tpu.memory_space<vmem>>, vector<1x8x32xf32>,
    return
  }
  func.func @transform_0(%arg0: i32, %arg1: i32) -> (i32, i32, i32) {
    %c0_i32 = arith.constant 0 : i32
    %c0_i32_0 = arith.constant 0 : i32
    return %arg0, %arg1, %c0_i32 : i32, i32, i32
  }
  func.func @transform_1(%arg0: i32, %arg1: i32) -> (i32, i32) {
    %c0_i32 = arith.constant 0 : i32
    %c0_i32_0 = arith.constant 0 : i32
    return %arg1, %c0_i32 : i32, i32
  }
  func.func @transform_2(%arg0: i32, %arg1: i32) -> (i32, i32) {
    %c0_i32 = arith.constant 0 : i32
    %c0_i32_0 = arith.constant 0 : i32
    return %arg1, %c0_i32 : i32, i32
  }
  func.func @transform_3(%arg0: i32, %arg1: i32) -> (i32, i32) {
    %c0_i32 = arith.constant 0 : i32
    %c0_i32_0 = arith.constant 0 : i32
    %c0_i32_1 = arith.constant 0 : i32
    return %c0_i32, %c0_i32_0 : i32, i32
  }
  func.func @transform_4(%arg0: i32, %arg1: i32) -> (i32, i32, i32) {
    %c0_i32 = arith.constant 0 : i32
    %c0_i32_0 = arith.constant 0 : i32
    return %arg0, %arg1, %c0_i32 : i32, i32, i32
  }
}

</mosaic_0001>

<bundles_post_ra>
// kernel: rotary_positional_embedding.1
= control target key start
LH: loop header
LB: loop body
LE: loop exit
PB: predicated region body
PF: predicated region fallthrough
CT: control target
= control target key end

     0   :  { %9 = vsyncpa [#allocation3], 0  ;;  %s1338_s0 = inlined_call_operand.vmem [shape: f32[2,8,32], index: 0, kind: input, shape index: {}]   ;;  %s1339_s1 = inlined_call_operand.vmem [shape: f32[8,32], index: 1, kind: input, shape index: {}]   ;;  %s1340_s2 = inlined_call_operand.vmem [shape: f32[8,32], index: 2, kind: input, shape index: {}]   ;;  %s1341_s3 = inlined_call_operand.vmem [shape: f32[32,32], index: 3, kind: input, shape index: {}]   ;;  %s1342_s4 = inlined_call_operand.hbm [shape: f32[2,8,32], index: 4, kind: output, shape index: {}]  }
   0x1   :  { %11 = vsyncpa [#allocation3 + $0x1], 0  ;;  %s1140_s15 = smov 0   ;;  %s1142_s16 = smov 0  }
   0x2   :  { %s1144_s17 = smov 0   ;;  %s1146_s18 = smov 0  }
   0x3   :  { %s1148_s19 = smov 0   ;;  %s1150_s20 = smov 0  }
   0x4 LB: > { %s868_s21 = sadd.s32 4294967295, %s1110_s20   ;;  %s869_s22 = sadd.s32 4294967294, %s1110_s20   ;;  %s1110_s20 = sphi %s1150_s20, %s17_s20   ;;  %s1106_s19 = sphi %s1148_s19, %s1349_s19   ;;  %s1102_s18 = sphi %s1146_s18, %s1348_s18   ;;  %s1098_s17 = sphi %s1144_s17, %s1347_s17   ;;  %s1094_s16 = sphi %s1142_s16, %s1346_s16   ;;  %s1090_s15 = sphi %s1140_s15, %s1345_s15  }
   0x5   : > { %s29_s23 = sadd.s32 1, %s1106_s19  ;;  %s139_s24 = sadd.s32 1, %s1098_s17 }
   0x6   : > { %p31_p0 = scmp.ge.s32.totalorder %s29_s23, 2  ;;  %p149_p1 = scmp.ne.s32.totalorder %s1098_s17, %s1094_s16 }
   0x7   : > { %p150_p2 = scmp.eq.s32.totalorder %s868_s21, 1  ;;  %p155_p3 = scmp.ne.s32.totalorder %s1094_s16, %s1090_s15 }
   0x8   : > { %s1351_s23 = smov (%p31_p0, %s29_s23), 0  ;;  %p156_p5 = scmp.eq.s32.totalorder %s869_s22, 1 }
   0x9   : > { %p1180_p4 = por %p150_p2, %p149_p1  ;;  %s134_s26 = ssub.s32 %s1106_s19, %s1351_s23 }
   0xa   : > { %p874_p6 = scmp.ge.s32.totalorder %s1110_s20, 1  ;;  %p137_p7 = scmp.eq.s32.totalorder %s134_s26, 0 }
   0xb   : > { %p1187_p8 = por %p156_p5, %p155_p3  ;;  %p201_p9 = scmp.lt.s32.totalorder %s1110_s20, 3 }
   0xc   : > { %s1193_s28 = scalar_select %p137_p7, %s1098_s17, %s139_s24  }
   0xd   : > { %p202_p10 = pnand %p874_p6, %p201_p9 }
   0xe   : > { %p237_p11 = scmp.lt.s32.totalorder (!%p202_p10), %s1102_s18, 1  ;;  %s234_s22 = sand.u32 (!%p202_p10), 1, %s1094_s16  }
   0xf   : > { %205 = sbr.rel (%p202_p10) target bundleno = 269 (0x10d), region = 36  ;;  %s875_s24 = sshll.u32 (!%p202_p10), %s234_s22, 3 }
  0x10   : > { %s878_s6 = sshll.u32 (!%p202_p10), %s1102_s18, 7  ;;  %s236_s7 = scalar_lea.vmem (!%p202_p10), [#allocation2], %s875_s24 }
  0x11   : > { %s767_s8 = sshll.u32 (!%p202_p10), %s236_s7, 4  ;;  %s1114_s14 = smov (!%p202_p10), [#allocation2]   ;;  %s768_s8 = int_to_ptr.vmem [resolvable:$true] %s767_s8 }
  0x12   : > { %s1034_s13 = scalar_lea.vmem (!%p202_p10), %s768_s8, 128 }
  0x13   : > { %p1035_p12 = scmp.ne.s32.totalorder (!%p202_p10), %s768_s8, %s1034_s13 }
  0x14   : > { %v256_v0 = vld [vmem:[%s1341_s3 + $0x18] sm:$0xff]  ;;  %v255_v1 = vld [vmem:[%s1341_s3 + $0x10] sm:$0xff]  ;;  %v254_v2 = vld [vmem:[%s1341_s3 + $0x8] sm:$0xff]  ;;  %v1112_v3 = vmov 0.0   ;;  %vm1113_vm0 = vmmov 0   ;;  %s238_s11 = scalar_select %p237_p11, %s1102_s18, 1 }
  0x15   : > { %911 = vmatprep.subr.mxu0 %v1112_v3  ;;  %v1206_v4 = vand.u32 4294901760, %v256_v0  ;;  %922 = vmatprep.subr.mxu1 %v1112_v3  ;;  %v1209_v5 = vand.u32 4294901760, %v255_v1  ;;  %v1211_v6 = vand.u32 4294901760, %v254_v2  ;;  %v253_v7 = vld [vmem:[%s1341_s3] sm:$0xff]  ;;  %vm257_vm1 = vcmask 261120   ;;  %p1036_p13 = pnand %p1035_p12, %p1180_p4 }
  0x16   : > { %v1216_v8 = vand.u32 4294901760, %v253_v7  ;;  %919 = vmatprep.mubr.msk.f32.mxu0 %vm1113_vm0, %v1112_v3  ;;  %930 = vmatprep.mubr.msk.f32.mxu1 %vm1113_vm0, %v1112_v3  ;;  %s876_s12 = sshll.u32 %s238_s11, 3  ;;  %v746_v44 = vld [vmem:[%s1339_s1] sm:$0xff]  ;;  %s765_s11 = scalar_lea.hbm %s1342_s4, %s878_s6 }
  0x17   : > { %912 = vmatpush3.msra.mxu0 %v1206_v4  ;;  %v366_v9 = vsub.f32 %v256_v0, %v1206_v4  ;;  %v1226_v10 = vsub.f32 %v255_v1, %v1209_v5  ;;  %v1229_v11 = vsub.f32 %v254_v2, %v1211_v6  ;;  %s243_s21 = scalar_lea.vmem %s1338_s0, %s876_s12  ;;  %v748_v47 = vld [vmem:[%s1340_s2] sm:$0xff]  ;;  %s753_s12 = scalar_lea.sflag [#allocation3], %s234_s22 }
  0x18   : > { %913 = vmatprep.subr.mxu0 %v1112_v3  ;;  %v1233_v12 = vsub.f32 %v253_v7, %v1216_v8  ;;  %v1243_v17 = vld [vmem:[%s243_s21] sm:$0xff]  ;;  %p1037_p0 = pneg %p1036_p13  ;;  %s1038_s21 = sshll.u32 %s1114_s14, 4  ;;  %s1039_s21 = int_to_ptr.vmem [resolvable:$false] %s1038_s21 }
  0x19   : > { %v367_v13 = vand.u32 4294901760, %v366_v9  ;;  %914 = vmatpush3.msra.mxu0 %v1209_v5  ;;  %v374_v14 = vand.u32 4294901760, %v1226_v10  ;;  %v381_v15 = vand.u32 4294901760, %v1229_v11  ;;  %v259_v21 = vsel %vm257_vm1, %v1243_v17, 0  ;;  %s1040_s18 = scalar_lea.vmem %s1039_s21, 256  ;;  %p1041_p1 = scmp.lt.s32.totalorder %s768_s8, %s1039_s21 }
  0x1a   : > { %915 = vmatprep.subr.mxu0 %v1112_v3  ;;  %v388_v16 = vand.u32 4294901760, %v1233_v12  ;;  %v330_v22 = vand.u32 4294901760, %v259_v21  ;;  %v747_v50 = vmul.f32 %v746_v44, %v1243_v17  ;;  %p1042_p2 = scmp.lt.s32.totalorder %s1040_s18, %s1034_s13 }
  0x1b   : > { %v368_v18 = vsub.f32 %v366_v9, %v367_v13  ;;  %v375_v19 = vsub.f32 %v1226_v10, %v374_v14  ;;  %916 = vmatpush3.msra.mxu0 %v1211_v6  ;;  %v382_v20 = vsub.f32 %v1229_v11, %v381_v15 }
  0x1c   : > { %917 = vmatprep.subr.mxu0 %v1112_v3  ;;  %v389_v25 = vsub.f32 %v1233_v12, %v388_v16  ;;  %v331_v26 = vsub.f32 %v259_v21, %v330_v22  ;;  %p1043_p3 = por %p1042_p2, %p1041_p1 }
  0x1d   : > { %v369_v23 = vand.u32 4294901760, %v368_v18  ;;  %v376_v24 = vand.u32 4294901760, %v375_v19  ;;  %918 = vmatpush3.msra.mxu0 %v1216_v8  ;;  %v383_v27 = vand.u32 4294901760, %v382_v20 }
  0x1e   : > { %933 = vmatprep.subr.mxu0 %v1112_v3  ;;  %v332_v28 = vand.u32 4294901760, %v331_v26  ;;  %v390_v29 = vand.u32 4294901760, %v389_v25  ;;  %p1044_p5 = pnand %p1043_p3, %p1037_p0 }
  0x1f   : > { %923 = vmatpush3.msra.mxu1 %v369_v23 }
  0x20   : > { %924 = vmatprep.subr.mxu1 %v1112_v3  ;;  %v333_v30 = vsub.f32 %v331_v26, %v332_v28 }
  0x21   : > { %925 = vmatpush3.msra.mxu1 %v376_v24 }
  0x22   : > { %926 = vmatprep.subr.mxu1 %v1112_v3  ;;  %v334_v31 = vand.u32 4294901760, %v333_v30 }
  0x23   : > { %927 = vmatpush3.msra.mxu1 %v383_v27 }
  0x24   : > { %928 = vmatprep.subr.mxu1 %v1112_v3  ;;  %920 = vmatmul.mubr.f32.vlgmr.msra.gmra.mxu0 %v334_v31 }
  0x25   : > { %929 = vmatpush3.msra.mxu1 %v390_v29  ;;  %934 = vmatpush3.msra.mxu0 %v366_v9 }
  0x26   : > { %931 = vmatmul.mubr.f32.vlgmr.msra.gmra.mxu1 %v330_v22  ;;  %944 = vmatprep.subr.mxu1 %v1112_v3 }
  0x27   : > { %935 = vmatprep.subr.mxu0 %v1112_v3  ;;  %945 = vmatpush3.msra.mxu1 %v1206_v4 }
  0x28   : > { %936 = vmatpush3.msra.mxu0 %v1226_v10  ;;  %946 = vmatprep.subr.mxu1 %v1112_v3 }
  0x29   : > { %937 = vmatprep.subr.mxu0 %v1112_v3  ;;  %947 = vmatpush3.msra.mxu1 %v1209_v5 }
  0x2a   : > { %938 = vmatpush3.msra.mxu0 %v1229_v11  ;;  %948 = vmatprep.subr.mxu1 %v1112_v3 }
  0x2b   : > { %939 = vmatprep.subr.mxu0 %v1112_v3  ;;  %949 = vmatpush3.msra.mxu1 %v1211_v6 }
  0x2c   : > { %940 = vmatpush3.msra.mxu0 %v1233_v12  ;;  %941 = vmatprep.mubr.msk.f32.mxu0 %vm1113_vm0, %v1112_v3 }
  0x2d   : > { %950 = vmatprep.subr.mxu1 %v1112_v3  ;;  %942 = vmatmul.mubr.f32.vlgmr.msra.gmra.mxu0 %v331_v26 }
  0x2e   : > { %951 = vmatpush3.msra.mxu1 %v1216_v8  ;;  %952 = vmatprep.mubr.msk.f32.mxu1 %vm1113_vm0, %v1112_v3 }
  0x2f   : > { %955 = vmatprep.subr.mxu0 %v1112_v3  ;;  %953 = vmatmul.mubr.f32.vlgmr.msra.gmra.mxu1 %v332_v28 }
  0x30   : > { %956 = vmatpush3.msra.mxu0 %v367_v13  ;;  %966 = vmatprep.subr.mxu1 %v1112_v3 }
  0x31   : > { %957 = vmatprep.subr.mxu0 %v1112_v3  ;;  %967 = vmatpush3.msra.mxu1 %v1206_v4 }
  0x32   : > { %958 = vmatpush3.msra.mxu0 %v374_v14  ;;  %968 = vmatprep.subr.mxu1 %v1112_v3 }
  0x33   : > { %959 = vmatprep.subr.mxu0 %v1112_v3  ;;  %969 = vmatpush3.msra.mxu1 %v1209_v5 }
  0x34   : > { %960 = vmatpush3.msra.mxu0 %v381_v15  ;;  %970 = vmatprep.subr.mxu1 %v1112_v3 }
  0x35   : > { %961 = vmatprep.subr.mxu0 %v1112_v3  ;;  %971 = vmatpush3.msra.mxu1 %v1211_v6 }
  0x36   : > { %962 = vmatpush3.msra.mxu0 %v388_v16  ;;  %963 = vmatprep.mubr.msk.f32.mxu0 %vm1113_vm0, %v1112_v3 }
  0x37   : > { %972 = vmatprep.subr.mxu1 %v1112_v3  ;;  %964 = vmatmul.mubr.f32.vlgmr.msra.gmra.mxu0 %v330_v22 }
  0x38   : > { %973 = vmatpush3.msra.mxu1 %v1216_v8  ;;  %974 = vmatprep.mubr.msk.f32.mxu1 %vm1113_vm0, %v1112_v3 }
  0x39   : > { %975 = vmatmul.mubr.f32.vlgmr.msra.gmra.mxu1 %v330_v22 }
  0xe4   : > { %v336_v32 = vpop.f32.mrf.mxu0 }
  0xe6   : > { %v427_v33 = vpop.f32.mrf.mxu1  ;;  %v921_v34 = vpop.f32.mrf.mxu0 }
  0xe7   : > { %v428_v39 = vadd.f32 %v427_v33, %v336_v32 }
  0xe8   : > { %v932_v35 = vpop.f32.mrf.mxu1 }
  0xed   : > { %v507_v36 = vpop.f32.mrf.mxu0 }
  0xee   : > { %v508_v41 = vadd.f32 %v507_v36, %v428_v39 }
  0xef   : > { %v584_v37 = vpop.f32.mrf.mxu1  ;;  %v943_v38 = vpop.f32.mrf.mxu0 }
  0xf0   : > { %v585_v42 = vadd.f32 %v584_v37, %v508_v41 }
  0xf1   : > { %v954_v40 = vpop.f32.mrf.mxu1 }
  0xf7   : > { %v667_v43 = vpop.f32.mrf.mxu0 }
  0xf8   : > { %v668_v45 = vadd.f32 %v667_v43, %v585_v42 }
  0xf9   : > { %v742_v46 = vpop.f32.mrf.mxu1  ;;  %v965_v48 = vpop.f32.mrf.mxu0 }
  0xfa   : > { %v743_v49 = vadd.f32 %v742_v46, %v668_v45 }
  0xfb   : > { %v976_v51 = vpop.f32.mrf.mxu1 }
  0xfc   : > { %v749_v52 = vmul.f32 %v748_v47, %v743_v49 }
  0xfe   : > { %v750_v53 = vadd.f32 %v749_v52, %v747_v50 }
 0x100   : > { %751 = vst.msk [vmem:[%s236_s7] sm:$0xff] %vm257_vm1, %v750_v53 }
 0x101   : > { %1047 = shalt.err (!%p1044_p5)
}
 0x102   : > { %s1048_s24 = scalar_lea.hbm %s765_s11, 128  ;;  %s1052_s29 = scalar_lea.hbm %s1342_s4, 256 }
 0x103   : > { %p1049_p6 = scmp.ne.s32.totalorder %s765_s11, %s1048_s24  ;;  %p1053_p10 = scmp.lt.s32.totalorder %s765_s11, %s1342_s4 }
 0x104   : > { %p1054_p11 = scmp.lt.s32.totalorder %s1052_s29, %s1048_s24 }
 0x105   : > { %p1050_p7 = pnand %p1049_p6, %p1180_p4 }
 0x106   : > { %p1055_p12 = por %p1054_p11, %p1053_p10 }
 0x107   : > { %p1051_p9 = pneg %p1050_p7 }
 0x109   : > { %p1056_p13 = pnand %p1055_p12, %p1051_p9 }
 0x10b   : > { %1059 = shalt.err (!%p1056_p13)
}
 0x10c   : > { %977 = dma.vmem_to_hbm [thread:$0]  (%p1180_p4), %s768_s8, 128, %s765_s11, %s753_s12  }
 0x10d PF: > { %p983_p0 = scmp.ge.s32.totalorder %s1110_s20, 2  ;;  %s779_s6 = sand.u32 1, %s1090_s15  }
 0x10e   : > { %s780_s7 = scalar_lea.sflag [#allocation3], %s779_s6 }
 0x10f   : > { %p980_p1 = pnand %p983_p0, %p1187_p8 }
 0x111   : > { %p981_p2 = pneg %p980_p1 }
 0x113   : > { %1085 = dma.done.wait (%p981_p2), %s780_s7, 128  }
 0x114   : > { %1087 = vsyncadd (%p981_p2), %s780_s7, 4294967168  ;;  %s17_s20 = sadd.s32 1, %s1110_s20   ;;  %s1345_s15 = smov %s1094_s16 }
 0x115   : > { %p14_p3 = scmp.ge.s32.totalorder %s17_s20, 4   ;;  %s1346_s16 = smov %s1098_s17 }
 0x116   : > { %s1347_s17 = smov %s1193_s28  ;;  %s1348_s18 = smov %s1106_s19 }
 0x117   : > { %s1349_s19 = smov %s1351_s23  ;;  %16 = sbr.rel (!%p14_p3) target bundleno = 4 (0x4), region = 77 }
 0x11c   :  { %785 = vsyncpa [#allocation3], 1 }
 0x11d   :  { %787 = vsyncpa [#allocation3 + $0x1], 1 }

</bundles_post_ra>
